<compile_context>
chip_gen: v6e
topology: v6e:2x2x1
jax: 0.10.0
libtpu: 0.0.40
codegen_flags: <defaults>
</compile_context>

<pallas_src>
import functools

import jax
import jax.numpy as jnp
from jax.experimental import pallas as pl
from jax.experimental.pallas import tpu as pltpu

LANES = 128
SUBLANES = 8
MAX_TILE_ROWS = 8192                    # (8192, 128) f32 = 4 MiB per block
VMEM_LIMIT_BYTES = 32 * 1024 * 1024


def _num_streaming_cores():
    """2 only on multi-TensorCore chips (v7x); 1 on single-TC chips (v5e/v6e)."""
    try:
        info = pltpu.get_tpu_info()
        for attr in ("num_tensorcores", "tensorcores_per_chip",
                     "num_cores", "cores_per_chip"):
            v = getattr(info, attr, None)
            if isinstance(v, int) and v >= 1:
                return 2 if v >= 2 else 1
    except Exception:
        pass
    try:
        kind = jax.devices()[0].device_kind.lower()
        if ("v7" in kind) or ("7x" in kind):
            return 2
    except Exception:
        pass
    return 1


def _mse_partial_kernel(p_ref, g_ref, o_ref, *, tile_rows, acc_rows,
                        rows_valid, steps_per_core, needs_mask):
    c = pl.program_id(0)                 # core-split axis ("parallel")
    i = pl.program_id(1)                 # streaming axis ("arbitrary")

    @pl.when(i == 0)
    def _():
        o_ref[...] = jnp.zeros_like(o_ref)

    d = p_ref[...].astype(jnp.float32) - g_ref[...].astype(jnp.float32)
    sq = d * d
    groups = tile_rows // acc_rows

    def _fold(x):
        # Fold into acc_rows x 128 (several independent accumulator vregs):
        # gives the scheduler ILP instead of one long serial VALU add chain.
        return x.reshape(groups, acc_rows, LANES).sum(axis=0)

    if not needs_mask:
        o_ref[...] += _fold(sq)
    else:
        # INVARIANT (do not break): `step` below is the *unclamped* global
        # step, while the input index_map clamps the block index to the last
        # valid block.  Rows whose global row-id >= rows_valid are either
        #   (a) unspecified data from the ragged last block's OOB region, or
        #   (b) a re-read of the last valid block on the clamped duplicate
        #       step of the second core,
        # and both are zeroed by the row mask (select does not propagate
        # NaN/Inf from the unselected arm).
        step = c * steps_per_core + i
        row_end = (step + 1) * tile_rows

        @pl.when(row_end <= rows_valid)          # common fully-valid step
        def _():
            o_ref[...] += _fold(sq)

        @pl.when(row_end > rows_valid)           # ragged / duplicate step
        def _():
            row0 = step * tile_rows
            row_ids = row0 + jax.lax.broadcasted_iota(
                jnp.int32, (tile_rows, 1), 0)
            o_ref[...] += _fold(jnp.where(row_ids < rows_valid, sq, 0.0))


def _mse_sum_2d(p2, g2, rows):
    """Sum of squared differences over a (rows, 128) slab via Pallas."""
    num_cores = _num_streaming_cores()

    tile_rows = rows if rows <= MAX_TILE_ROWS else MAX_TILE_ROWS
    acc_rows = next((cand for cand in (64, 32, 16, 8)
                     if tile_rows % cand == 0), tile_rows)

    total_steps = -(-rows // tile_rows)
    if total_steps < num_cores:          # don't split a single-step stream
        num_cores = 1
    steps_per_core = -(-total_steps // num_cores)
    needs_mask = (rows % tile_rows != 0) or (
        steps_per_core * num_cores != total_steps)
    last_step = total_steps - 1

    def in_index_map(c, i):
        # Clamp the (at most one) overhanging step of the second core onto a
        # valid block; its contribution is zeroed by the in-kernel row mask.
        step = c * steps_per_core + i
        return (jnp.minimum(step, last_step), 0)

    kernel = functools.partial(
        _mse_partial_kernel,
        tile_rows=tile_rows,
        acc_rows=acc_rows,
        rows_valid=rows,
        steps_per_core=steps_per_core,
        needs_mask=needs_mask,
    )

    in_bytes = 2 * rows * LANES * p2.dtype.itemsize
    out_bytes = num_cores * acc_rows * LANES * 4
    cost = pl.CostEstimate(flops=3 * rows * LANES, transcendentals=0,
                           bytes_accessed=in_bytes + out_bytes)

    partials = pl.pallas_call(
        kernel,
        out_shape=jax.ShapeDtypeStruct((num_cores, acc_rows, LANES),
                                       jnp.float32),
        grid_spec=pltpu.PrefetchScalarGridSpec(
            num_scalar_prefetch=0,
            grid=(num_cores, steps_per_core),
            in_specs=[
                pl.BlockSpec((tile_rows, LANES), in_index_map),
                pl.BlockSpec((tile_rows, LANES), in_index_map),
            ],
            out_specs=pl.BlockSpec((None, acc_rows, LANES),
                                   lambda c, i: (c, 0, 0)),
        ),
        compiler_params=pltpu.CompilerParams(
            dimension_semantics=("parallel", "arbitrary"),
            vmem_limit_bytes=VMEM_LIMIT_BYTES,
        ),
        cost_estimate=cost,
    )(p2, g2)

    # Single cross-lane/sublane reduction, done exactly once.
    return jnp.sum(partials, dtype=jnp.float32)


def intensity_loss(preds, gts):
    """Pallas equivalent of IntensityLoss.forward: mean((preds - gts)**2)."""
    assert preds.shape == gts.shape
    n_elems = preds.size

    p = preds.reshape(-1)
    g = gts.reshape(-1)

    rows = n_elems // LANES
    lane_tail = n_elems - rows * LANES

    total = jnp.zeros((), jnp.float32)
    if rows > 0:
        main = rows * LANES
        if lane_tail == 0:
            p2 = p.reshape(rows, LANES)          # free reshape (contiguous)
            g2 = g.reshape(rows, LANES)
        else:
            # Rare path (n_elems % 128 != 0): XLA materializes this prefix
            # slice (one copy of the main part); image tensors never hit it.
            p2 = jax.lax.slice(p, (0,), (main,)).reshape(rows, LANES)
            g2 = jax.lax.slice(g, (0,), (main,)).reshape(rows, LANES)
        total = total + _mse_sum_2d(p2, g2, rows)
    if lane_tail > 0:
        # <128-element lane tail: plain XLA ops, negligible cost.
        pt = jax.lax.slice(p, (rows * LANES,), (n_elems,)).astype(jnp.float32)
        gt = jax.lax.slice(g, (rows * LANES,), (n_elems,)).astype(jnp.float32)
        total = total + jnp.sum((pt - gt) * (pt - gt), dtype=jnp.float32)

    return (total / jnp.float32(n_elems)).astype(jnp.float32)


if __name__ == "__main__":
    key = jax.random.PRNGKey(0)
    k1, k2 = jax.random.split(key)
    # IntensityLoss has no parameters; inputs are prediction / ground-truth
    # image tensors in NCHW.
    preds = jax.random.normal(k1, (2, 4, 16, 16), dtype=jnp.float32)
    gts = jax.random.normal(k2, (2, 4, 16, 16), dtype=jnp.float32)

    out = intensity_loss(preds, gts)
    out = jax.block_until_ready(out)

    ref = jnp.mean((preds - gts) ** 2)
    assert jnp.allclose(out, ref, rtol=1e-5, atol=1e-6), (out, ref)
    print("KERNEL_OK")
</pallas_src>

<mosaic_0001>
module attributes {stable_mosaic.version = 11 : i64} {
  func.func @_mse_partial_kernel(%arg0: i32, %arg1: i32, %arg2: memref<16x128xf32, #tpu.memory_space<vmem>>, %arg3: memref<16x128xf32, #tpu.memory_space<vmem>>, %arg4: memref<1x16x128xf32, #tpu.memory_space<vmem>>) attributes {dimension_semantics = [#tpu.dimension_semantics<parallel>, #tpu.dimension_semantics<arbitrary>], iteration_bounds = array<i64: 1, 1>, scalar_prefetch = 0 : i64, scratch_operands = 0 : i64, tpu.core_type = #tpu.core_type<tc>, window_params = [{transform_indices = @transform_0, window_bounds = array<i64: 16, 128>}, {transform_indices = @transform_1, window_bounds = array<i64: 16, 128>}, {transform_indices = @transform_2, window_bounds = array<i64: 1, 16, 128>}]} {
    %c0_i32 = arith.constant 0 : i32
    %0 = arith.cmpi eq, %arg1, %c0_i32 : i32
    %1 = arith.extui %0 : i1 to i32
    %c0_i32_0 = arith.constant 0 : i32
    %2 = arith.cmpi ne, %1, %c0_i32_0 : i32
    scf.if %2 {
      %cst_10 = arith.constant 0.000000e+00 : f32
      %15 = vector.broadcast %cst_10 : f32 to vector<16x128xf32>
      %c0_11 = arith.constant 0 : index
      %c0_12 = arith.constant 0 : index
      %c0_13 = arith.constant 0 : index
      %16 = vector.load %arg4[%c0_11, %c0_12, %c0_13] : memref<1x16x128xf32, #tpu.memory_space<vmem>>, vector<1x16x128xf32>
      %17 = vector.shape_cast %16 : vector<1x16x128xf32> to vector<16x128xf32>
      %18 = vector.shape_cast %15 : vector<16x128xf32> to vector<1x16x128xf32>
      tpu.vector_store %arg4[%c0_11, %c0_12, %c0_13], %18 {strides = array<i32>} : memref<1x16x128xf32, #tpu.memory_space<vmem>>, vector<1x16x128xf32>,
    } else {
    }
    %c0 = arith.constant 0 : index
    %c0_1 = arith.constant 0 : index
    %3 = vector.load %arg2[%c0, %c0_1] : memref<16x128xf32, #tpu.memory_space<vmem>>, vector<16x128xf32>
    %c0_2 = arith.constant 0 : index
    %c0_3 = arith.constant 0 : index
    %4 = vector.load %arg3[%c0_2, %c0_3] : memref<16x128xf32, #tpu.memory_space<vmem>>, vector<16x128xf32>
    %5 = arith.subf %3, %4 : vector<16x128xf32>
    %6 = arith.mulf %5, %5 : vector<16x128xf32>
    %c0_4 = arith.constant 0 : index
    %c0_5 = arith.constant 0 : index
    %c0_6 = arith.constant 0 : index
    %7 = vector.load %arg4[%c0_4, %c0_5, %c0_6] : memref<1x16x128xf32, #tpu.memory_space<vmem>>, vector<1x16x128xf32>
    %8 = vector.shape_cast %7 : vector<1x16x128xf32> to vector<16x128xf32>
    %9 = vector.shape_cast %6 : vector<16x128xf32> to vector<1x16x128xf32>
    %cst = arith.constant dense<0.000000e+00> : vector<16x128xf32>
    %10 = vector.multi_reduction <add>, %9, %cst [0] : vector<1x16x128xf32> to vector<16x128xf32>
    %11 = arith.addf %8, %10 : vector<16x128xf32>
    %c0_7 = arith.constant 0 : index
    %c0_8 = arith.constant 0 : index
    %c0_9 = arith.constant 0 : index
    %12 = vector.load %arg4[%c0_7, %c0_8, %c0_9] : memref<1x16x128xf32, #tpu.memory_space<vmem>>, vector<1x16x128xf32>
    %13 = vector.shape_cast %12 : vector<1x16x128xf32> to vector<16x128xf32>
    %14 = vector.shape_cast %11 : vector<16x128xf32> to vector<1x16x128xf32>
    tpu.vector_store %arg4[%c0_7, %c0_8, %c0_9], %14 {strides = array<i32>} : memref<1x16x128xf32, #tpu.memory_space<vmem>>, vector<1x16x128xf32>,
    return
  }
  func.func @transform_0(%arg0: i32, %arg1: i32) -> (i32, i32) {
    %c1_i32 = arith.constant 1 : i32
    %0 = arith.muli %arg0, %c1_i32 : i32
    %1 = arith.addi %0, %arg1 : i32
    %c0_i32 = arith.constant 0 : i32
    %2 = arith.minsi %1, %c0_i32 : i32
    %c0_i32_0 = arith.constant 0 : i32
    %c0_i32_1 = arith.constant 0 : i32
    return %2, %c0_i32_0 : i32, i32
  }
  func.func @transform_1(%arg0: i32, %arg1: i32) -> (i32, i32) {
    %c1_i32 = arith.constant 1 : i32
    %0 = arith.muli %arg0, %c1_i32 : i32
    %1 = arith.addi %0, %arg1 : i32
    %c0_i32 = arith.constant 0 : i32
    %2 = arith.minsi %1, %c0_i32 : i32
    %c0_i32_0 = arith.constant 0 : i32
    %c0_i32_1 = arith.constant 0 : i32
    return %2, %c0_i32_0 : i32, i32
  }
  func.func @transform_2(%arg0: i32, %arg1: i32) -> (i32, i32, i32) {
    %c0_i32 = arith.constant 0 : i32
    %c0_i32_0 = arith.constant 0 : i32
    %c0_i32_1 = arith.constant 0 : i32
    return %arg0, %c0_i32, %c0_i32_0 : i32, i32, i32
  }
}

</mosaic_0001>

<bundles_post_ra>
// kernel: tpu_custom_call.1
= control target key start
LH: loop header
LB: loop body
LE: loop exit
PB: predicated region body
PF: predicated region fallthrough
CT: control target
= control target key end

     0   :  { %7 = vsyncpa [#allocation3], 0  ;;  %s214_s0 = inlined_call_operand.hbm [shape: f32[16,128], index: 0, kind: input, shape index: {}]   ;;  %s215_s1 = inlined_call_operand.hbm [shape: f32[16,128], index: 1, kind: input, shape index: {}]   ;;  %s216_s2 = inlined_call_operand.hbm [shape: f32[1,16,128], index: 2, kind: output, shape index: {}]  }
   0x1   :  { %8 = vsyncpa [#allocation6], 0 }
   0x2   :  { %9 = vsyncpa [#allocation4], 0  ;;  %s176_s9 = smov [#allocation2]  }
   0x3   :  { %s21_s10 = sshll.u32 %s176_s9, 4  ;;  %s22_s10 = int_to_ptr.vmem [resolvable:$true] %s21_s10 }
   0x4   :  { %s118_s11 = scalar_lea.vmem %s22_s10, 256  ;;  %p123_p1 = scmp.lt.s32.totalorder %s22_s10, %s22_s10 }
   0x5   :  { %p119_p0 = scmp.ne.s32.totalorder %s22_s10, %s118_s11  ;;  %p124_p2 = scmp.lt.s32.totalorder %s118_s11, %s118_s11 }
   0x7   :  { %p125_p3 = por %p124_p2, %p123_p1 }
   0x9   :  { %p126_p4 = pnand %p125_p3, %p119_p0 }
   0xb   :  { %129 = shalt.err (!%p126_p4)
}
   0xc   :  { %s177_s12 = smov 128   ;;  %s178_s13 = smov 8  }
   0xd   :  { %27 = dma.hbm_to_vmem [thread:$0]  %s214_s0, 256, %s22_s10, [#allocation3], %s177_s12, %s177_s12, %s178_s13  }
   0xe   :  { %s179_s16 = smov [#allocation5]  }
   0xf   :  { %s39_s17 = sshll.u32 %s179_s16, 4  ;;  %s40_s17 = int_to_ptr.vmem [resolvable:$true] %s39_s17 }
  0x10   :  { %s138_s18 = scalar_lea.vmem %s40_s17, 256  ;;  %p143_p6 = scmp.lt.s32.totalorder %s40_s17, %s40_s17 }
  0x11   :  { %p139_p5 = scmp.ne.s32.totalorder %s40_s17, %s138_s18  ;;  %p144_p7 = scmp.lt.s32.totalorder %s138_s18, %s138_s18 }
  0x13   :  { %p145_p8 = por %p144_p7, %p143_p6 }
  0x15   :  { %p146_p9 = pnand %p145_p8, %p139_p5 }
  0x17   :  { %149 = shalt.err (!%p146_p9)
}
  0x18   :  { %45 = dma.hbm_to_vmem [thread:$0]  %s215_s1, 256, %s40_s17, [#allocation6], %s177_s12, %s177_s12, %s178_s13  }
  0x19   :  { %170 = dma.done.wait [#allocation3], 256  }
  0x1a   :  { %171 = vsyncadd [#allocation3], 4294967040 }
  0x1b   :  { %172 = dma.done.wait [#allocation6], 256  }
  0x1c   :  { %173 = vsyncadd [#allocation6], 4294967040  ;;  %v66_v0 = vld [vmem:[#allocation2] sm:$0xff]  ;;  %v68_v1 = vld [vmem:[#allocation5] sm:$0xff]  ;;  %s180_s0 = smov [#allocation7]  }
  0x1d   :  { %v67_v2 = vld [vmem:[#allocation2 + $0x8] sm:$0xff]  ;;  %v70_v3 = vsub.f32 %v66_v0, %v68_v1  ;;  %v69_v4 = vld [vmem:[#allocation5 + $0x8] sm:$0xff]  ;;  %s87_s21 = sshll.u32 %s180_s0, 4  ;;  %s88_s21 = int_to_ptr.vmem [resolvable:$true] %s87_s21 }
  0x1e   :  { %v71_v5 = vsub.f32 %v67_v2, %v69_v4  ;;  %s150_s22 = scalar_lea.vmem %s88_s21, 256  ;;  %p155_p11 = scmp.lt.s32.totalorder %s88_s21, %s88_s21 }
  0x1f   :  { %v72_v6 = vmul.f32 %v70_v3, %v70_v3  ;;  %p151_p10 = scmp.ne.s32.totalorder %s88_s21, %s150_s22  ;;  %p156_p12 = scmp.lt.s32.totalorder %s150_s22, %s150_s22 }
  0x20   :  { %v73_v7 = vmul.f32 %v71_v5, %v71_v5 }
  0x21   :  { %80 = vst [vmem:[#allocation7] sm:$0xff] %v72_v6  ;;  %p157_p13 = por %p156_p12, %p155_p11 }
  0x22   :  { %81 = vst [vmem:[#allocation7 + $0x8] sm:$0xff] %v73_v7 }
  0x23   :  { %p158_p0 = pnand %p157_p13, %p151_p10 }
  0x25   :  { %161 = shalt.err (!%p158_p0)
}
  0x26   :  { %93 = dma.vmem_to_hbm [thread:$0]  %s88_s21, 256, %s216_s2, [#allocation4], %s177_s12, %s177_s12, %s178_s13  }
  0x27   :  { %174 = dma.done.wait [#allocation4], 256  }
  0x28   :  { %175 = vsyncadd [#allocation4], 4294967040 }
  0x29   :  { %97 = vsyncpa [#allocation3], 1 }
  0x2a   :  { %98 = vsyncpa [#allocation6], 1 }
  0x2b   :  { %99 = vsyncpa [#allocation4], 1 }

</bundles_post_ra>
